<compile_context>
chip_gen: v7x
topology: tpu7x:2x2x1
jax: 0.10.0
libtpu: 0.0.40
codegen_flags: <defaults>
</compile_context>

<pallas_src>
import jax
import jax.numpy as jnp
from jax.experimental import pallas as pl
from jax.experimental.pallas import tpu as pltpu

HIDDEN = 10                     # LSTM hidden size per direction
K_PAD = 128                     # lane-padded input / gate-block width
GATE_IDX = {'i': (0, 10), 'g': (20, 30), 'o': (30, 40)}   # PyTorch gate order i,f,g,o


def _round_up(a, m):
    return (a + m - 1) // m * m


def _sigmoid(x):
    return 1.0 / (1.0 + jnp.exp(-x))


# --------------------------------------------------------------------------
# Kernel: one fused gate matmul + full-vreg activations + two fc matmuls.
# --------------------------------------------------------------------------
def scheduler_kernel(xin_ref, wg_ref, wfc_ref, bfc_ref, out_ref):
    x = xin_ref[...]                                            # (TB, 128)

    # Fused gate matmul: (TB,128) @ (128,384) -> [i | g | o] 128-lane blocks.
    # Bias is folded in via the constant-1 lane (row 127 of wg holds biases).
    gates = jnp.dot(x, wg_ref[...], preferred_element_type=jnp.float32)

    i_blk = gates[:, 0:128]                                     # lane-aligned slices
    g_blk = gates[:, 128:256]
    o_blk = gates[:, 256:384]

    # h lanes 0..39 = [g_fwd | g_bwd | l_fwd | l_bwd]; pad lanes are exactly 0
    # (sigmoid(0) * tanh(sigmoid(0) * tanh(0)) == 0), so feat needs no masking.
    feat = _sigmoid(o_blk) * jnp.tanh(_sigmoid(i_blk) * jnp.tanh(g_blk))   # (TB, 128)

    w1 = wfc_ref[0:128, :]                                      # (128, 128) padded fc1
    w2 = wfc_ref[128:256, :]                                    # (128, 128) padded fc2
    b1 = bfc_ref[:, 0:128]                                      # (1, 128)
    b2 = bfc_ref[:, 128:256]                                    # (1, 128), lane 0 = b2

    z1 = jnp.tanh(jnp.dot(feat, w1, preferred_element_type=jnp.float32) + b1)
    z2 = jnp.dot(z1, w2, preferred_element_type=jnp.float32) + b2          # lane 0 valid
    out_ref[...] = z2


# --------------------------------------------------------------------------
# Parameter construction / host-side packing.
# --------------------------------------------------------------------------
def init_params(N, key):
    """Deterministic synthetic parameters in native PyTorch shapes."""
    ks = jax.random.split(key, 16)
    u = lambda k, shape, s=0.2: jax.random.uniform(k, shape, jnp.float32, -s, s)
    p = {}
    # grad_lstm: weight_ih (40, N), fused bias (40,) = b_ih + b_hh (fwd / reverse)
    p['gw_f'] = u(ks[0], (4 * HIDDEN, N))
    p['gb_f'] = u(ks[1], (4 * HIDDEN,)) + u(ks[2], (4 * HIDDEN,))
    p['gw_b'] = u(ks[3], (4 * HIDDEN, N))
    p['gb_b'] = u(ks[4], (4 * HIDDEN,)) + u(ks[5], (4 * HIDDEN,))
    # loss_lstm: weight_ih (40, 1)
    p['lw_f'] = u(ks[6], (4 * HIDDEN, 1))
    p['lb_f'] = u(ks[7], (4 * HIDDEN,)) + u(ks[8], (4 * HIDDEN,))
    p['lw_b'] = u(ks[9], (4 * HIDDEN, 1))
    p['lb_b'] = u(ks[10], (4 * HIDDEN,)) + u(ks[11], (4 * HIDDEN,))
    # fc1: (20, 40), fc2: (1, 20)
    p['w1'] = u(ks[12], (20, 40))
    p['b1'] = u(ks[13], (20,))
    p['w2'] = u(ks[14], (1, 20))
    p['b2'] = u(ks[15], (1,))
    return p


def pack_params(p, N):
    """Pack raw params into 3 lane-dense slabs (done once, host-side)."""
    assert N <= 126, "need lane N for loss and lane 127 for the bias row"

    # Fused gate weight: (128, 3*128), blocks [i | g | o], f-gate dropped.
    wg = jnp.zeros((K_PAD, 3 * K_PAD), jnp.float32)
    for b_idx, gate in enumerate(('i', 'g', 'o')):
        lo, hi = GATE_IDX[gate]
        base = b_idx * K_PAD
        # grad-LSTM input weights (x occupies lanes 0..N-1 of xin)
        wg = wg.at[0:N, base + 0:base + 10].set(p['gw_f'][lo:hi, :].T)
        wg = wg.at[0:N, base + 10:base + 20].set(p['gw_b'][lo:hi, :].T)
        # loss-LSTM input weights (loss occupies lane N of xin)
        wg = wg.at[N, base + 20:base + 30].set(p['lw_f'][lo:hi, 0])
        wg = wg.at[N, base + 30:base + 40].set(p['lw_b'][lo:hi, 0])
        # fused biases live in row 127 (xin lane 127 is the constant 1)
        wg = wg.at[127, base + 0:base + 10].set(p['gb_f'][lo:hi])
        wg = wg.at[127, base + 10:base + 20].set(p['gb_b'][lo:hi])
        wg = wg.at[127, base + 20:base + 30].set(p['lb_f'][lo:hi])
        wg = wg.at[127, base + 30:base + 40].set(p['lb_b'][lo:hi])

    # fc slab: rows 0..127 = padded fc1 weight, rows 128..255 = padded fc2 weight.
    wfc = jnp.zeros((2 * K_PAD, K_PAD), jnp.float32)
    wfc = wfc.at[0:40, 0:20].set(p['w1'].T)            # (40, 20)
    wfc = wfc.at[K_PAD:K_PAD + 20, 0].set(p['w2'][0])  # (20,) into column 0

    # bias slab: lanes 0..19 = b1, lane 128 = b2, rest 0.
    bfc = jnp.zeros((1, 2 * K_PAD), jnp.float32)
    bfc = bfc.at[0, 0:20].set(p['b1'])
    bfc = bfc.at[0, K_PAD].set(p['b2'][0])
    return wg, wfc, bfc


# --------------------------------------------------------------------------
# Wrapper.
# --------------------------------------------------------------------------
def scheduler_forward(loss, x, packed):
    """loss: (B,), x: (B, N)  ->  (B, 1)"""
    wg, wfc, bfc = packed
    B, N = x.shape
    assert N <= 126

    # Batch tiling: one tile if small; 512-row tiles on a "parallel" grid axis
    # otherwise (lets megacore shard large B; weights stay resident).
    B_pad = _round_up(B, 8)
    if B_pad <= 512:
        tb = B_pad
    else:
        tb = 512
        B_pad = _round_up(B, tb)
    grid = (B_pad // tb,)

    # Pack [x | loss | 0 ... 0 | 1] into a lane-padded (B_pad, 128) input with a
    # single concatenate (avoids per-field scatter ops host-side).
    xf = x.astype(jnp.float32)
    lf = loss.astype(jnp.float32).reshape(B, 1)
    mid_zeros = jnp.zeros((B, K_PAD - N - 2), jnp.float32)
    ones = jnp.ones((B, 1), jnp.float32)
    xin = jnp.concatenate([xf, lf, mid_zeros, ones], axis=1)     # (B, 128)
    if B_pad != B:
        xin = jnp.pad(xin, ((0, B_pad - B), (0, 0)))

    out = pl.pallas_call(
        scheduler_kernel,
        out_shape=jax.ShapeDtypeStruct((B_pad, K_PAD), jnp.float32),
        grid_spec=pltpu.PrefetchScalarGridSpec(
            num_scalar_prefetch=0,
            grid=grid,
            in_specs=[
                pl.BlockSpec((tb, K_PAD), lambda i: (i, 0)),         # xin tile
                pl.BlockSpec((K_PAD, 3 * K_PAD), lambda i: (0, 0)),  # gate weights
                pl.BlockSpec((2 * K_PAD, K_PAD), lambda i: (0, 0)),  # fc weights
                pl.BlockSpec((1, 2 * K_PAD), lambda i: (0, 0)),      # fc biases
            ],
            out_specs=pl.BlockSpec((tb, K_PAD), lambda i: (i, 0)),
        ),
        compiler_params=pltpu.CompilerParams(
            dimension_semantics=("parallel",)),
    )(xin, wg, wfc, bfc)

    # Lane-dense (B_pad, 128) store inside the kernel; slice to (B, 1) here.
    return out[:B, 0:1]


# --------------------------------------------------------------------------
# Pure-JAX reference mirroring the PyTorch forward (for validation).
# --------------------------------------------------------------------------
def scheduler_forward_ref(loss, x, p):
    B = x.shape[0]
    lo = loss.reshape(B, 1)

    def cell(inp, w_ih, b):
        gates = inp @ w_ih.T + b
        i = jax.nn.sigmoid(gates[:, 0:10])
        g = jnp.tanh(gates[:, 20:30])
        o = jax.nn.sigmoid(gates[:, 30:40])
        return o * jnp.tanh(i * g)

    g_out = jnp.concatenate([cell(x, p['gw_f'], p['gb_f']),
                             cell(x, p['gw_b'], p['gb_b'])], axis=1)
    l_out = jnp.concatenate([cell(lo, p['lw_f'], p['lb_f']),
                             cell(lo, p['lw_b'], p['lb_b'])], axis=1)
    feat = jnp.concatenate([g_out, l_out], axis=1)
    z = jnp.tanh(feat @ p['w1'].T + p['b1'])
    return z @ p['w2'].T + p['b2']


if __name__ == "__main__":
    B, N = 8, 32
    key = jax.random.PRNGKey(0)
    k_params, k_x, k_loss = jax.random.split(key, 3)

    raw = init_params(N, k_params)
    packed = pack_params(raw, N)

    x = jax.random.normal(k_x, (B, N), jnp.float32)       # "input" (grad features)
    loss = jax.random.normal(k_loss, (B,), jnp.float32)   # per-sample loss scalars

    out = scheduler_forward(loss, x, packed)
    out = jax.block_until_ready(out)

    ref = scheduler_forward_ref(loss, x, raw)
    assert out.shape == (B, 1)
    assert jnp.allclose(out, ref, atol=1e-5, rtol=1e-5), "mismatch vs pure-JAX reference"

    # TODO(synk): sample_task / sample_gumbel / gumbel_softmax are host-side
    # stochastic sampling utilities (not part of forward) and are not kernels.
    print("KERNEL_OK")
</pallas_src>

<mosaic_0001>
module attributes {stable_mosaic.version = 11 : i64} {
  func.func @scheduler_kernel(%arg0: i32, %arg1: memref<8x128xf32, #tpu.memory_space<vmem>>, %arg2: memref<128x384xf32, #tpu.memory_space<vmem>>, %arg3: memref<256x128xf32, #tpu.memory_space<vmem>>, %arg4: memref<1x256xf32, #tpu.memory_space<vmem>>, %arg5: memref<8x128xf32, #tpu.memory_space<vmem>>) attributes {dimension_semantics = [#tpu.dimension_semantics<parallel>], iteration_bounds = array<i64: 1>, scalar_prefetch = 0 : i64, scratch_operands = 0 : i64, tpu.core_type = #tpu.core_type<tc>, window_params = [{transform_indices = @transform_0, window_bounds = array<i64: 8, 128>}, {pipeline_mode = #tpu.pipeline_mode<synchronous>, transform_indices = @transform_1, window_bounds = array<i64: 128, 384>}, {pipeline_mode = #tpu.pipeline_mode<synchronous>, transform_indices = @transform_2, window_bounds = array<i64: 256, 128>}, {pipeline_mode = #tpu.pipeline_mode<synchronous>, transform_indices = @transform_3, window_bounds = array<i64: 1, 256>}, {transform_indices = @transform_4, window_bounds = array<i64: 8, 128>}]} {
    %c0 = arith.constant 0 : index
    %c0_0 = arith.constant 0 : index
    %0 = vector.load %arg1[%c0, %c0_0] : memref<8x128xf32, #tpu.memory_space<vmem>>, vector<8x128xf32>
    %c0_1 = arith.constant 0 : index
    %c0_2 = arith.constant 0 : index
    %1 = vector.load %arg2[%c0_1, %c0_2] : memref<128x384xf32, #tpu.memory_space<vmem>>, vector<128x384xf32>
    %cst = arith.constant dense<0.000000e+00> : vector<8x384xf32>
    %2 = tpu.matmul %0, %1, %cst {dimension_numbers = #tpu.dot_dimension_numbers<[1], [0], [0], [1], [0, 0, 1, 1], [], []>} : vector<8x128xf32>, vector<128x384xf32>, vector<8x384xf32> -> vector<8x384xf32>
    %3 = vector.extract_strided_slice %2 {offsets = [0, 0], sizes = [8, 128], strides = [1, 1]} : vector<8x384xf32> to vector<8x128xf32>
    %4 = vector.extract_strided_slice %2 {offsets = [0, 128], sizes = [8, 128], strides = [1, 1]} : vector<8x384xf32> to vector<8x128xf32>
    %5 = vector.extract_strided_slice %2 {offsets = [0, 256], sizes = [8, 128], strides = [1, 1]} : vector<8x384xf32> to vector<8x128xf32>
    %cst_3 = arith.constant 0.000000e+00 : f32
    %6 = vector.broadcast %cst_3 : f32 to vector<8x128xf32>
    %7 = arith.subf %6, %5 : vector<8x128xf32>
    %8 = math.exp %7 : vector<8x128xf32>
    %cst_4 = arith.constant 1.000000e+00 : f32
    %9 = vector.broadcast %cst_4 : f32 to vector<8x128xf32>
    %10 = arith.addf %9, %8 : vector<8x128xf32>
    %cst_5 = arith.constant 1.000000e+00 : f32
    %11 = vector.broadcast %cst_5 : f32 to vector<8x128xf32>
    %12 = arith.divf %11, %10 : vector<8x128xf32>
    %cst_6 = arith.constant 0.000000e+00 : f32
    %13 = vector.broadcast %cst_6 : f32 to vector<8x128xf32>
    %14 = arith.subf %13, %3 : vector<8x128xf32>
    %15 = math.exp %14 : vector<8x128xf32>
    %cst_7 = arith.constant 1.000000e+00 : f32
    %16 = vector.broadcast %cst_7 : f32 to vector<8x128xf32>
    %17 = arith.addf %16, %15 : vector<8x128xf32>
    %cst_8 = arith.constant 1.000000e+00 : f32
    %18 = vector.broadcast %cst_8 : f32 to vector<8x128xf32>
    %19 = arith.divf %18, %17 : vector<8x128xf32>
    %20 = math.tanh %4 : vector<8x128xf32>
    %21 = arith.mulf %19, %20 : vector<8x128xf32>
    %22 = math.tanh %21 : vector<8x128xf32>
    %23 = arith.mulf %12, %22 : vector<8x128xf32>
    %c0_9 = arith.constant 0 : index
    %c0_10 = arith.constant 0 : index
    %24 = vector.load %arg3[%c0_9, %c0_10] : memref<256x128xf32, #tpu.memory_space<vmem>>, vector<128x128xf32>
    %c128 = arith.constant 128 : index
    %c0_11 = arith.constant 0 : index
    %25 = vector.load %arg3[%c128, %c0_11] : memref<256x128xf32, #tpu.memory_space<vmem>>, vector<128x128xf32>
    %c0_12 = arith.constant 0 : index
    %c0_13 = arith.constant 0 : index
    %26 = vector.load %arg4[%c0_12, %c0_13] : memref<1x256xf32, #tpu.memory_space<vmem>>, vector<1x128xf32>
    %c0_14 = arith.constant 0 : index
    %c128_15 = arith.constant 128 : index
    %27 = vector.load %arg4[%c0_14, %c128_15] : memref<1x256xf32, #tpu.memory_space<vmem>>, vector<1x128xf32>
    %cst_16 = arith.constant dense<0.000000e+00> : vector<8x128xf32>
    %28 = tpu.matmul %23, %24, %cst_16 {dimension_numbers = #tpu.dot_dimension_numbers<[1], [0], [0], [1], [0, 0, 1, 1], [], []>} : vector<8x128xf32>, vector<128x128xf32>, vector<8x128xf32> -> vector<8x128xf32>
    %29 = vector.broadcast %26 : vector<1x128xf32> to vector<8x128xf32>
    %30 = arith.addf %28, %29 : vector<8x128xf32>
    %31 = math.tanh %30 : vector<8x128xf32>
    %cst_17 = arith.constant dense<0.000000e+00> : vector<8x128xf32>
    %32 = tpu.matmul %31, %25, %cst_17 {dimension_numbers = #tpu.dot_dimension_numbers<[1], [0], [0], [1], [0, 0, 1, 1], [], []>} : vector<8x128xf32>, vector<128x128xf32>, vector<8x128xf32> -> vector<8x128xf32>
    %33 = vector.broadcast %27 : vector<1x128xf32> to vector<8x128xf32>
    %34 = arith.addf %32, %33 : vector<8x128xf32>
    %c0_18 = arith.constant 0 : index
    %c0_19 = arith.constant 0 : index
    %35 = vector.load %arg5[%c0_18, %c0_19] : memref<8x128xf32, #tpu.memory_space<vmem>>, vector<8x128xf32>
    tpu.vector_store %arg5[%c0_18, %c0_19], %34 {strides = array<i32>} : memref<8x128xf32, #tpu.memory_space<vmem>>, vector<8x128xf32>,
    return
  }
  func.func @transform_0(%arg0: i32) -> (i32, i32) {
    %c0_i32 = arith.constant 0 : i32
    %c0_i32_0 = arith.constant 0 : i32
    return %arg0, %c0_i32 : i32, i32
  }
  func.func @transform_1(%arg0: i32) -> (i32, i32) {
    %c0_i32 = arith.constant 0 : i32
    %c0_i32_0 = arith.constant 0 : i32
    %c0_i32_1 = arith.constant 0 : i32
    return %c0_i32, %c0_i32_0 : i32, i32
  }
  func.func @transform_2(%arg0: i32) -> (i32, i32) {
    %c0_i32 = arith.constant 0 : i32
    %c0_i32_0 = arith.constant 0 : i32
    %c0_i32_1 = arith.constant 0 : i32
    return %c0_i32, %c0_i32_0 : i32, i32
  }
  func.func @transform_3(%arg0: i32) -> (i32, i32) {
    %c0_i32 = arith.constant 0 : i32
    %c0_i32_0 = arith.constant 0 : i32
    %c0_i32_1 = arith.constant 0 : i32
    return %c0_i32, %c0_i32_0 : i32, i32
  }
  func.func @transform_4(%arg0: i32) -> (i32, i32) {
    %c0_i32 = arith.constant 0 : i32
    %c0_i32_0 = arith.constant 0 : i32
    return %arg0, %c0_i32 : i32, i32
  }
}

</mosaic_0001>

<bundles_post_ra>
// kernel: tpu_custom_call.1
= control target key start
LH: loop header
LB: loop body
LE: loop exit
PB: predicated region body
PF: predicated region fallthrough
CT: control target
= control target key end

     0   :  { %9 = vsyncpa [#allocation3], 0  ;;  %s969_s0 = inlined_call_operand.hbm [shape: f32[8,128], index: 0, kind: input, shape index: {}]   ;;  %s970_s1 = inlined_call_operand.hbm [shape: f32[128,384], index: 1, kind: input, shape index: {}]   ;;  %s971_s2 = inlined_call_operand.hbm [shape: f32[256,128], index: 2, kind: input, shape index: {}]   ;;  %s972_s3 = inlined_call_operand.vmem [shape: f32[1,256], index: 3, kind: input, shape index: {}]   ;;  %s973_s4 = inlined_call_operand.hbm [shape: f32[8,128], index: 4, kind: output, shape index: {}]  }
   0x1   :  { %10 = vsyncpa [#allocation6], 0 }
   0x2   :  { %11 = vsyncpa [#allocation4], 0  ;;  %s848_s15 = smov [#allocation5]   ;;  %s754_s19 = scalar_lea.hbm %s970_s1, 6144 }
   0x3   :  { %s27_s16 = sshll.u32 %s848_s15, 4  ;;  %p755_p0 = scmp.ne.s32.totalorder %s970_s1, %s754_s19  ;;  %s28_s16 = int_to_ptr.vmem [resolvable:$true] %s27_s16 }
   0x4   :  { %p758_p1 = scmp.lt.u32.totalorder %s754_s19, %s970_s1 }
   0x6   :  { %p760_p2 = pnand %p758_p1, %p755_p0 }
   0x8   :  { %763 = shalt.err (!%p760_p2)
}
   0x9   :  { %s764_s24 = scalar_lea.vmem %s28_s16, 6144  ;;  %p769_p4 = scmp.lt.s32.totalorder %s28_s16, %s28_s16 }
   0xa   :  { %p765_p3 = scmp.ne.s32.totalorder %s28_s16, %s764_s24  ;;  %p770_p5 = scmp.lt.s32.totalorder %s764_s24, %s764_s24 }
   0xc   :  { %p771_p6 = por %p770_p5, %p769_p4 }
   0xe   :  { %p772_p7 = pnand %p771_p6, %p765_p3 }
  0x10   :  { %775 = shalt.err (!%p772_p7)
}
  0x11   :  { %s849_s25 = smov 384   ;;  %s850_s26 = smov 24  }
  0x12   :  { %33 = dma.hbm_to_vmem [thread:$0]  %s970_s1, 6144, %s28_s16, [#allocation6], %s849_s25, %s849_s25, %s850_s26  }
  0x13   :  { %s851_s29 = smov [#allocation2]   ;;  %s852_s5 = smov [#allocation7]  }
  0x14   :  { %s18_s30 = sshll.u32 %s851_s29, 4  ;;  %s39_s6 = sshll.u32 %s852_s5, 4  ;;  %s19_s30 = int_to_ptr.vmem [resolvable:$true] %s18_s30  ;;  %s40_s6 = int_to_ptr.vmem [resolvable:$true] %s39_s6 }
  0x15   :  { %s776_s9 = scalar_lea.hbm %s969_s0, 128 }
  0x16   :  { %p777_p8 = scmp.ne.s32.totalorder %s969_s0, %s776_s9  ;;  %p780_p9 = scmp.lt.u32.totalorder %s776_s9, %s969_s0 }
  0x18   :  { %p782_p10 = pnand %p780_p9, %p777_p8 }
  0x1a   :  { %785 = shalt.err (!%p782_p10)
}
  0x1b   :  { %s786_s1 = scalar_lea.vmem %s19_s30, 128  ;;  %p791_p12 = scmp.lt.s32.totalorder %s19_s30, %s19_s30 }
  0x1c   :  { %p787_p11 = scmp.ne.s32.totalorder %s19_s30, %s786_s1  ;;  %p792_p13 = scmp.lt.s32.totalorder %s786_s1, %s786_s1 }
  0x1e   :  { %p793_p0 = por %p792_p13, %p791_p12 }
  0x20   :  { %p794_p1 = pnand %p793_p0, %p787_p11 }
  0x22   :  { %797 = shalt.err (!%p794_p1)
}
  0x23   :  { %21 = dma.hbm_to_vmem [thread:$0]  %s969_s0, 128, %s19_s30, [#allocation3]  }
  0x24   :  { %s798_s18 = scalar_lea.hbm %s971_s2, 4096 }
  0x25   :  { %p799_p2 = scmp.ne.s32.totalorder %s971_s2, %s798_s18  ;;  %p802_p3 = scmp.lt.u32.totalorder %s798_s18, %s971_s2 }
  0x27   :  { %p804_p4 = pnand %p802_p3, %p799_p2 }
  0x29   :  { %807 = shalt.err (!%p804_p4)
}
  0x2a   :  { %s808_s23 = scalar_lea.vmem %s40_s6, 4096  ;;  %p813_p6 = scmp.lt.s32.totalorder %s40_s6, %s40_s6 }
  0x2b   :  { %p809_p5 = scmp.ne.s32.totalorder %s40_s6, %s808_s23  ;;  %p814_p7 = scmp.lt.s32.totalorder %s808_s23, %s808_s23 }
  0x2d   :  { %p815_p8 = por %p814_p7, %p813_p6 }
  0x2f   :  { %p816_p9 = pnand %p815_p8, %p809_p5 }
  0x31   :  { %819 = shalt.err (!%p816_p9)
}
  0x32   :  { %s853_s0 = smov 128   ;;  %s854_s24 = smov 8  }
  0x33   :  { %45 = dma.hbm_to_vmem [thread:$0]  %s971_s2, 4096, %s40_s6, [#allocation6], %s853_s0, %s853_s0, %s854_s24  }
  0x34   :  { %842 = dma.done.wait [#allocation3], 128  }
  0x35   :  { %843 = vsyncadd [#allocation3], 4294967168 }
  0x36   :  { %844 = dma.done.wait [#allocation6], 10240  }
  0x37   :  { %845 = vsyncadd [#allocation6], 4294957056  ;;  %v855_v0 = vmov 0.0|0.0   ;;  %v856_v1 = vmov 0.0   ;;  %vm857_vm0 = vmmov 0   ;;  %v59_v2 = vld [vmem:[#allocation5 + $0x8] sm:$0xff] }
  0x38   :  { %657 = vmatprep.subr.bf16.mxu1 %v855_v0  ;;  %170 = vmatprep.mubr.f32.mxu0 %v856_v1  ;;  %v62_v3 = vld [vmem:[#allocation5 + $0x20] sm:$0xff]  ;;  %v61_v6 = vld [vmem:[#allocation5 + $0x18] sm:$0xff]  ;;  %v68_v8 = vld [vmem:[#allocation5 + $0x50] sm:$0xff]  ;;  %s858_s30 = smov [#allocation8]  }
  0x39   :  { %552 = vmatprep.mubr.msk.f32.mxu1 %vm857_vm0, %v856_v1  ;;  %v58_v4 = vld [vmem:[#allocation5] sm:$0xff]  ;;  %v625_v5 = vpack.c.bf16 %v62_v3, %v59_v2  ;;  %v65_v7 = vld [vmem:[#allocation5 + $0x38] sm:$0xff]  ;;  %v64_v11 = vld [vmem:[#allocation5 + $0x30] sm:$0xff]  ;;  %s457_s5 = sshll.u32 %s858_s30, 4  ;;  %s458_s5 = int_to_ptr.vmem [resolvable:$true] %s457_s5 }
  0x3a   :  { %v627_v9 = vpack.c.bf16 %v61_v6, %v58_v4  ;;  %v629_v10 = vpack.c.bf16 %v68_v8, %v65_v7  ;;  %v67_v12 = vld [vmem:[#allocation5 + $0x48] sm:$0xff]  ;;  %v74_v14 = vld [vmem:[#allocation5 + $0x80] sm:$0xff]  ;;  %v73_v18 = vld [vmem:[#allocation5 + $0x78] sm:$0xff]  ;;  %s820_s6 = scalar_lea.vmem %s458_s5, 128  ;;  %p825_p11 = scmp.lt.s32.totalorder %s458_s5, %s458_s5 }
  0x3b   :  { %v71_v13 = vld [vmem:[#allocation5 + $0x68] sm:$0xff]  ;;  %626 = vmatprep.subr.bf16.mxu0 %v625_v5  ;;  %v631_v15 = vpack.c.bf16 %v67_v12, %v64_v11  ;;  %v70_v16 = vld [vmem:[#allocation5 + $0x60] sm:$0xff]  ;;  %v60_v19 = vld [vmem:[#allocation5 + $0x10] sm:$0xff]  ;;  %p821_p10 = scmp.ne.s32.totalorder %s458_s5, %s820_s6  ;;  %p826_p12 = scmp.lt.s32.totalorder %s820_s6, %s820_s6 }
  0x3c   :  { %628 = vmatpush1.bf16.msra.mxu0 %v627_v9  ;;  %v633_v17 = vpack.c.bf16 %v74_v14, %v71_v13  ;;  %v63_v20 = vld [vmem:[#allocation5 + $0x28] sm:$0xff]  ;;  %v77_v21 = vld [vmem:[#allocation5 + $0x98] sm:$0xff]  ;;  %v80_v22 = vld [vmem:[#allocation5 + $0xb0] sm:$0xff]  ;;  %v635_v26 = vpack.c.bf16 %v73_v18, %v70_v16 }
  0x3d   :  { %630 = vmatprep.subr.bf16.mxu0 %v629_v10  ;;  %v658_v23 = vpack.c.bf16 %v63_v20, %v60_v19  ;;  %v66_v24 = vld [vmem:[#allocation5 + $0x40] sm:$0xff]  ;;  %v69_v25 = vld [vmem:[#allocation5 + $0x58] sm:$0xff]  ;;  %v76_v27 = vld [vmem:[#allocation5 + $0x90] sm:$0xff]  ;;  %v637_v29 = vpack.c.bf16 %v80_v22, %v77_v21  ;;  %p827_p13 = por %p826_p12, %p825_p11 }
  0x3e   :  { %v661_v28 = vpack.c.bf16 %v69_v25, %v66_v24  ;;  %v79_v30 = vld [vmem:[#allocation5 + $0xa8] sm:$0xff]  ;;  %v72_v31 = vld [vmem:[#allocation5 + $0x70] sm:$0xff]  ;;  %v86_v34 = vld [vmem:[#allocation5 + $0xe0] sm:$0xff] }
  0x3f   :  { %659 = vmatpush3.bf16.msra.mxu1 %v658_v23  ;;  %v75_v32 = vld [vmem:[#allocation5 + $0x88] sm:$0xff]  ;;  %v639_v35 = vpack.c.bf16 %v79_v30, %v76_v27  ;;  %v82_v36 = vld [vmem:[#allocation5 + $0xc0] sm:$0xff]  ;;  %v85_v39 = vld [vmem:[#allocation5 + $0xd8] sm:$0xff]  ;;  %p828_p0 = pnand %p827_p13, %p821_p10 }
  0x40   :  { %632 = vmatpush1.bf16.msra.mxu0 %v631_v15  ;;  %660 = vmatprep.subr.bf16.mxu1 %v855_v0  ;;  %v83_v33 = vld [vmem:[#allocation5 + $0xc8] sm:$0xff]  ;;  %v664_v37 = vpack.c.bf16 %v75_v32, %v72_v31  ;;  %v78_v40 = vld [vmem:[#allocation5 + $0xa0] sm:$0xff]  ;;  %v81_v41 = vld [vmem:[#allocation5 + $0xb8] sm:$0xff]  ;;  %v643_v44 = vpack.c.bf16 %v85_v39, %v82_v36 }
  0x41   :  { %634 = vmatprep.subr.bf16.mxu0 %v633_v17  ;;  %v641_v38 = vpack.c.bf16 %v86_v34, %v83_v33  ;;  %v89_v42 = vld [vmem:[#allocation5 + $0xf8] sm:$0xff]  ;;  %v92_v43 = vld [vmem:[#allocation5 + $0x110] sm:$0xff]  ;;  %v667_v46 = vpack.c.bf16 %v81_v41, %v78_v40  ;;  %v91_v48 = vld [vmem:[#allocation5 + $0x108] sm:$0xff] }
  0x42   :  { %v88_v45 = vld [vmem:[#allocation5 + $0xf0] sm:$0xff]  ;;  %v645_v47 = vpack.c.bf16 %v92_v43, %v89_v42  ;;  %v87_v50 = vld [vmem:[#allocation5 + $0xe8] sm:$0xff]  ;;  %v98_v52 = vld [vmem:[#allocation5 + $0x140] sm:$0xff] }
  0x43   :  { %662 = vmatpush3.bf16.msra.mxu1 %v661_v28  ;;  %v84_v49 = vld [vmem:[#allocation5 + $0xd0] sm:$0xff]  ;;  %v95_v51 = vld [vmem:[#allocation5 + $0x128] sm:$0xff]  ;;  %v647_v53 = vpack.c.bf16 %v91_v48, %v88_v45  ;;  %v94_v54 = vld [vmem:[#allocation5 + $0x120] sm:$0xff] }
  0x44   :  { %636 = vmatpush1.bf16.msra.mxu0 %v635_v26  ;;  %663 = vmatprep.subr.bf16.mxu1 %v855_v0  ;;  %v670_v55 = vpack.c.bf16 %v87_v50, %v84_v49  ;;  %v649_v56 = vpack.c.bf16 %v98_v52, %v95_v51  ;;  %v97_v57 = vld [vmem:[#allocation5 + $0x138] sm:$0xff]  ;;  %v90_v58 = vld [vmem:[#allocation5 + $0x100] sm:$0xff]  ;;  %v104_v61 = vld [vmem:[#allocation5 + $0x170] sm:$0xff] }
  0x45   :  { %638 = vmatprep.subr.bf16.mxu0 %v637_v29  ;;  %v93_v59 = vld [vmem:[#allocation5 + $0x118] sm:$0xff]  ;;  %v651_v62 = vpack.c.bf16 %v97_v57, %v94_v54  ;;  %v100_v63 = vld [vmem:[#allocation5 + $0x150] sm:$0xff]  ;;  %v103_v4 = vld [vmem:[#allocation5 + $0x168] sm:$0xff] }
  0x46   :  { %v101_v60 = vld [vmem:[#allocation5 + $0x158] sm:$0xff]  ;;  %v673_v2 = vpack.c.bf16 %v93_v59, %v90_v58  ;;  %v96_v5 = vld [vmem:[#allocation5 + $0x130] sm:$0xff]  ;;  %v99_v6 = vld [vmem:[#allocation5 + $0x148] sm:$0xff]  ;;  %v655_v7 = vpack.c.bf16 %v103_v4, %v100_v63 }
  0x47   :  { %665 = vmatpush3.bf16.msra.mxu1 %v664_v37  ;;  %v653_v3 = vpack.c.bf16 %v104_v61, %v101_v60  ;;  %v676_v8 = vpack.c.bf16 %v99_v6, %v96_v5  ;;  %v102_v9 = vld [vmem:[#allocation5 + $0x160] sm:$0xff]  ;;  %v105_v10 = vld [vmem:[#allocation5 + $0x178] sm:$0xff]  ;;  %v264_v14 = vld [vmem:[#allocation7 + $0x8] sm:$0xff] }
  0x48   :  { %640 = vmatpush1.bf16.msra.mxu0 %v639_v35  ;;  %666 = vmatprep.subr.bf16.mxu1 %v855_v0  ;;  %v57_v11 = vld [vmem:[#allocation2] sm:$0xff]  ;;  %v679_v12 = vpack.c.bf16 %v105_v10, %v102_v9  ;;  %v263_v13 = vld [vmem:[#allocation7] sm:$0xff]  ;;  %v265_v16 = vld [vmem:[#allocation7 + $0x10] sm:$0xff] }
  0x49   :  { %642 = vmatprep.subr.bf16.mxu0 %v641_v38  ;;  %v682_v15 = vpack.c.bf16 %v264_v14, %v263_v13  ;;  %v266_v17 = vld [vmem:[#allocation7 + $0x18] sm:$0xff]  ;;  %v267_v19 = vld [vmem:[#allocation7 + $0x20] sm:$0xff]  ;;  %v268_v20 = vld [vmem:[#allocation7 + $0x28] sm:$0xff] }
  0x4a   :  { %v685_v18 = vpack.c.bf16 %v266_v17, %v265_v16  ;;  %v688_v21 = vpack.c.bf16 %v268_v20, %v267_v19  ;;  %v269_v22 = vld [vmem:[#allocation7 + $0x30] sm:$0xff]  ;;  %v271_v24 = vld [vmem:[#allocation7 + $0x40] sm:$0xff]  ;;  %v272_v25 = vld [vmem:[#allocation7 + $0x48] sm:$0xff] }
  0x4b   :  { %668 = vmatpush3.bf16.msra.mxu1 %v667_v46  ;;  %v694_v26 = vpack.c.bf16 %v272_v25, %v271_v24  ;;  %v273_v27 = vld [vmem:[#allocation7 + $0x50] sm:$0xff]  ;;  %v274_v28 = vld [vmem:[#allocation7 + $0x58] sm:$0xff]  ;;  %v275_v30 = vld [vmem:[#allocation7 + $0x60] sm:$0xff] }
  0x4c   :  { %644 = vmatpush1.bf16.msra.mxu0 %v643_v44  ;;  %669 = vmatprep.subr.bf16.mxu1 %v855_v0  ;;  %v697_v29 = vpack.c.bf16 %v274_v28, %v273_v27  ;;  %v276_v31 = vld [vmem:[#allocation7 + $0x68] sm:$0xff]  ;;  %v277_v33 = vld [vmem:[#allocation7 + $0x70] sm:$0xff]  ;;  %v278_v34 = vld [vmem:[#allocation7 + $0x78] sm:$0xff] }
  0x4d   :  { %646 = vmatprep.subr.bf16.mxu0 %v645_v47  ;;  %v700_v32 = vpack.c.bf16 %v276_v31, %v275_v30  ;;  %v703_v35 = vpack.c.bf16 %v278_v34, %v277_v33  ;;  %v279_v36 = vld [vmem:[#allocation7 + $0x80] sm:$0xff]  ;;  %v280_v37 = vld [vmem:[#allocation7 + $0x88] sm:$0xff]  ;;  %v281_v38 = vld [vmem:[#allocation7 + $0x90] sm:$0xff] }
  0x4e   :  { %v706_v39 = vpack.c.bf16 %v280_v37, %v279_v36  ;;  %v282_v40 = vld [vmem:[#allocation7 + $0x98] sm:$0xff]  ;;  %v283_v42 = vld [vmem:[#allocation7 + $0xa0] sm:$0xff]  ;;  %v284_v43 = vld [vmem:[#allocation7 + $0xa8] sm:$0xff] }
  0x4f   :  { %671 = vmatpush3.bf16.msra.mxu1 %v670_v55  ;;  %v709_v41 = vpack.c.bf16 %v282_v40, %v281_v38  ;;  %v712_v44 = vpack.c.bf16 %v284_v43, %v283_v42  ;;  %v285_v45 = vld [vmem:[#allocation7 + $0xb0] sm:$0xff]  ;;  %v286_v46 = vld [vmem:[#allocation7 + $0xb8] sm:$0xff]  ;;  %v287_v48 = vld [vmem:[#allocation7 + $0xc0] sm:$0xff] }
  0x50   :  { %648 = vmatpush1.bf16.msra.mxu0 %v647_v53  ;;  %672 = vmatprep.subr.bf16.mxu1 %v855_v0  ;;  %v715_v47 = vpack.c.bf16 %v286_v46, %v285_v45  ;;  %v288_v49 = vld [vmem:[#allocation7 + $0xc8] sm:$0xff]  ;;  %v291_v10 = vld [vmem:[#allocation7 + $0xe0] sm:$0xff]  ;;  %v293_v13 = vld [vmem:[#allocation7 + $0xf0] sm:$0xff] }
  0x51   :  { %650 = vmatprep.subr.bf16.mxu0 %v649_v56  ;;  %v718_v50 = vpack.c.bf16 %v288_v49, %v287_v48  ;;  %v294_v14 = vld [vmem:[#allocation7 + $0xf8] sm:$0xff] }
  0x52   :  { %v467_v16 = vld [vmem:[%s972_s3] ss:$0 sm:$0xff] }
  0x53   :  { %674 = vmatpush3.bf16.msra.mxu1 %v673_v2 }
  0x54   :  { %652 = vmatpush1.bf16.msra.mxu0 %v651_v62  ;;  %675 = vmatprep.subr.bf16.mxu1 %v855_v0 }
  0x55   :  { %654 = vmatprep.subr.bf16.mxu0 %v653_v3 }
  0x57   :  { %677 = vmatpush3.bf16.msra.mxu1 %v676_v8  ;;  %v290_v8 = vld [vmem:[#allocation7 + $0xd8] sm:$0xff] }
  0x58   :  { %656 = vmatpush1.bf16.msra.mxu0 %v655_v7  ;;  %678 = vmatprep.subr.bf16.mxu1 %v855_v0  ;;  %v289_v7 = vld [vmem:[#allocation7 + $0xd0] sm:$0xff] }
  0x59   :  { %681 = vmatprep.subr.bf16.mxu0 %v855_v0  ;;  %v721_v9 = vpack.c.bf16 %v290_v8, %v289_v7 }
  0x5b   :  { %171 = vmatmul.mubr.f32.vlgmr.msra.gmra.mrb[0].mxu0 %v57_v11  ;;  %680 = vmatpush3.bf16.msra.mxu1 %v679_v12 }
  0x5c   :  { %587 = vmatprep.mubr.msk.f32.mxu0 %vm857_vm0, %v856_v1  ;;  %705 = vmatprep.subr.bf16.mxu1 %v855_v0 }
  0x5d   :  { %683 = vmatpush3.bf16.msra.mxu0 %v682_v15  ;;  %v727_v15 = vpack.c.bf16 %v294_v14, %v293_v13 }
  0x5e   :  { %553 = vmatmul.mubr.f32.vlgmr.msra.gmra.mrb[0].mxu1 %v57_v11  ;;  %684 = vmatprep.subr.bf16.mxu0 %v855_v0  ;;  %v292_v11 = vld [vmem:[#allocation7 + $0xe8] sm:$0xff] }
  0x5f   :  { %622 = vmatprep.mubr.msk.f32.mxu1 %vm857_vm0, %v856_v1  ;;  %v270_v1 = vld [vmem:[#allocation7 + $0x38] sm:$0xff]  ;;  %707 = vmatpush3.bf16.msra.mxu1 %v706_v39  ;;  %v724_v12 = vpack.c.bf16 %v292_v11, %v291_v10 }
  0x60   :  { %v691_v23 = vpack.c.bf16 %v270_v1, %v269_v22  ;;  %708 = vmatprep.subr.bf16.mxu1 %v855_v0 }
  0x61   :  { %686 = vmatpush3.bf16.msra.mxu0 %v685_v18 }
  0x62   :  { %687 = vmatprep.subr.bf16.mxu0 %v855_v0 }
  0x63   :  { %710 = vmatpush3.bf16.msra.mxu1 %v709_v41 }
  0x64   :  { %711 = vmatprep.subr.bf16.mxu1 %v855_v0 }
  0x65   :  { %689 = vmatpush3.bf16.msra.mxu0 %v688_v21  ;;  %v468_v21 = vld [vmem:[%s972_s3 + $0x1] ss:$0 sm:$0xff] }
  0x66   :  { %690 = vmatprep.subr.bf16.mxu0 %v855_v0 }
  0x67   :  { %713 = vmatpush3.bf16.msra.mxu1 %v712_v44 }
  0x68   :  { %714 = vmatprep.subr.bf16.mxu1 %v855_v0 }
  0x69   :  { %692 = vmatpush3.bf16.msra.mxu0 %v691_v23 }
  0x6a   :  { %693 = vmatprep.subr.bf16.mxu0 %v855_v0 }
  0x6b   :  { %716 = vmatpush3.bf16.msra.mxu1 %v715_v47 }
  0x6c   :  { %717 = vmatprep.subr.bf16.mxu1 %v855_v0 }
  0x6d   :  { %695 = vmatpush3.bf16.msra.mxu0 %v694_v26 }
  0x6e   :  { %696 = vmatprep.subr.bf16.mxu0 %v855_v0 }
  0x6f   :  { %719 = vmatpush3.bf16.msra.mxu1 %v718_v50 }
  0x70   :  { %720 = vmatprep.subr.bf16.mxu1 %v855_v0 }
  0x71   :  { %698 = vmatpush3.bf16.msra.mxu0 %v697_v29 }
  0x72   :  { %699 = vmatprep.subr.bf16.mxu0 %v855_v0 }
  0x73   :  { %722 = vmatpush3.bf16.msra.mxu1 %v721_v9 }
  0x74   :  { %723 = vmatprep.subr.bf16.mxu1 %v855_v0 }
  0x75   :  { %701 = vmatpush3.bf16.msra.mxu0 %v700_v32 }
  0x76   :  { %702 = vmatprep.subr.bf16.mxu0 %v855_v0 }
  0x77   :  { %725 = vmatpush3.bf16.msra.mxu1 %v724_v12 }
  0x78   :  { %726 = vmatprep.subr.bf16.mxu1 %v855_v0 }
  0x79   :  { %704 = vmatpush3.bf16.msra.mxu0 %v703_v35 }
  0x7b   :  { %728 = vmatpush3.bf16.msra.mxu1 %v727_v15 }
 0x12e   :  { %v172_v51 = vpop.f32.mrb[0].mxu0 }
 0x12f   :  { %v253_v52 = vsub.f32 0.0, %v172_v51  ;;  %v174_v53 = vpop.f32.mrb[1].mxu0 }
 0x131   :  { %v254_v54 = vmul.f32 1.442695, %v253_v52  ;;  %v243_v55 = vpop.f32.mrb[0].mxu1 }
 0x132   :  { %v247_v56 = vsub.f32 0.0, %v243_v55  ;;  %v554_v57 = vpop.f32.mrb[1].mxu1 }
 0x133   :  { %740 = vpow2.f32 %v254_v54 }
 0x134   :  { %v248_v58 = vmul.f32 1.442695, %v247_v56 }
 0x136   :  { %742 = vpow2.f32 %v248_v58 }
 0x137   :  { %744 = vtanh.f32 %v174_v53 }
 0x13d   :  { %v741_v59 = vpop.eup %740 }
 0x13e   :  { %v256_v60 = vadd.f32 1.0, %v741_v59 }
 0x140   :  { %746 = vrcp.f32 %v256_v60  ;;  %v743_v61 = vpop.eup %742 }
 0x141   :  { %v250_v62 = vadd.f32 1.0, %v743_v61  ;;  %v745_v63 = vpop.eup %744 }
 0x143   :  { %748 = vrcp.f32 %v250_v62 }
 0x14a   :  { %v747_v2 = vpop.eup %746 }
 0x14b   :  { %v260_v3 = vmul.f32 %v747_v2, %v745_v63 }
 0x14d   :  { %750 = vtanh.f32 %v260_v3  ;;  %v749_v4 = vpop.eup %748 }
 0x157   :  { %v751_v5 = vpop.eup %750 }
 0x158   :  { %v262_v6 = vmul.f32 %v751_v5, %v749_v4 }
 0x15a   :  { %588 = vmatmul.mubr.f32.vlgmr.msra.gmra.mrb[2].mxu0 %v262_v6 }
 0x22d   :  { %v369_v17 = vpop.f32.mrb[2].mxu0 }
 0x22e   :  { %v370_v18 = vadd.f32 %v467_v16, %v369_v17  ;;  %v589_v19 = vpop.f32.mrb[3].mxu0 }
 0x230   :  { %752 = vtanh.f32 %v370_v18 }
 0x23a   :  { %v753_v20 = vpop.eup %752 }
 0x23b   :  { %623 = vmatmul.mubr.f32.vlgmr.msra.gmra.mrb[2].mxu1 %v753_v20 }
 0x30e   :  { %v446_v22 = vpop.f32.mrb[2].mxu1 }
 0x30f   :  { %v447_v1 = vadd.f32 %v468_v21, %v446_v22  ;;  %v624_v0 = vpop.f32.mrb[3].mxu1 }
 0x311   :  { %450 = vst [vmem:[#allocation8] sm:$0xff] %v447_v1 }
 0x312   :  { %831 = shalt.err (!%p828_p0)
}
 0x313   :  { %s832_s9 = scalar_lea.hbm %s973_s4, 128 }
 0x314   :  { %p833_p1 = scmp.ne.s32.totalorder %s973_s4, %s832_s9  ;;  %p836_p2 = scmp.lt.u32.totalorder %s832_s9, %s973_s4 }
 0x316   :  { %p838_p3 = pnand %p836_p2, %p833_p1 }
 0x318   :  { %841 = shalt.err (!%p838_p3)
}
 0x319   :  { %460 = dma.vmem_to_hbm [thread:$0]  %s458_s5, 128, %s973_s4, [#allocation4]  }
 0x31a   :  { %846 = dma.done.wait [#allocation4], 128  }
 0x31b   :  { %847 = vsyncadd [#allocation4], 4294967168 }
 0x31c   :  { %464 = vsyncpa [#allocation3], 1 }
 0x31d   :  { %465 = vsyncpa [#allocation6], 1 }
 0x31e   :  { %466 = vsyncpa [#allocation4], 1 }

</bundles_post_ra>
